<compile_context>
chip_gen: v6e
topology: v6e:2x2x1
jax: 0.10.0
libtpu: 0.0.40
codegen_flags: <defaults>
</compile_context>

<pallas_src>
import functools

import jax
import jax.numpy as jnp
from jax.experimental import pallas as pl
from jax.experimental.pallas import tpu as pltpu


def _round_up(x, m):
    return ((x + m - 1) // m) * m


def _dict_init_kernel(x_ref, p_ref, out_ref, acc_ref, s_ref, *,
                      hw, hw_tile, num_hw_tiles, mask_cols):
    # x_ref:   (bt, c, hw_tile)
    # p_ref:   (bt, k, hw_tile)
    # out_ref: (bt, k, c)      lane-dense output (c on the lane axis)
    # acc_ref: (bt, k, c) f32  VMEM accumulator over hw tiles (multi-tile only)
    # s_ref:   (bt, k, 1) f32  per-slot spatial mass accumulator
    t = pl.program_id(1)

    x = x_ref[...]                               # (bt, c, hw_tile)
    p = p_ref[...].astype(jnp.float32)           # (bt, k, hw_tile)

    # softmax over the dictionary-slot axis k (axis=1), max-stabilized.
    m = jnp.max(p, axis=1, keepdims=True)        # (bt, 1, hw_tile)
    e = jnp.exp(p - m)                           # (bt, k, hw_tile)
    denom = jnp.sum(e, axis=1, keepdims=True)    # (bt, 1, hw_tile)  (>= 1)
    p_sm = e * pl.reciprocal(denom, approx=True)

    # Mask spatial-padding columns (global column index >= true hw) so they
    # add no mass to either accumulator. Statically elided when hw is not
    # padded (the common case).
    if mask_cols:
        col = jax.lax.broadcasted_iota(jnp.int32, p_sm.shape, 2) + t * hw_tile
        p_sm = jnp.where(col < hw, p_sm, 0.0)

    # Per-slot spatial mass and the (k, c) partial product. Contraction over
    # hw keeps both operands lane-dense.
    s_part = jnp.sum(p_sm, axis=-1, keepdims=True)           # (bt, k, 1)
    acc_part = jax.lax.dot_general(
        p_sm.astype(x.dtype), x,
        dimension_numbers=(((2,), (2,)), ((0,), (0,))),
        preferred_element_type=jnp.float32)                   # (bt, k, c)

    if num_hw_tiles == 1:
        # Single spatial tile: finalize immediately, no scratch round-trip.
        inv = pl.reciprocal(s_part + 1e-6, approx=True)       # (bt, k, 1)
        out_ref[...] = (acc_part * inv).astype(out_ref.dtype)
    else:
        @pl.when(t == 0)
        def _init():
            acc_ref[...] = jnp.zeros_like(acc_ref)
            s_ref[...] = jnp.zeros_like(s_ref)

        s_ref[...] += s_part
        acc_ref[...] += acc_part

        # Finalize: scale the tiny (k, c) accumulator by 1 / (s + 1e-6).
        @pl.when(t == pl.num_programs(1) - 1)
        def _finalize():
            inv = pl.reciprocal(s_ref[...] + 1e-6, approx=True)
            out_ref[...] = (acc_ref[...] * inv).astype(out_ref.dtype)


def dictionary_initialization(x, p, *, hw_tile=None, batch_block=None,
                              vmem_limit_bytes=64 * 1024 * 1024):
    """x: (b, c, h, w), p: (b, k, h, w) -> (b, c, k)"""
    b, c, h, w = x.shape
    k = p.shape[1]
    hw = h * w

    x_flat = x.reshape(b, c, hw)
    p_flat = p.reshape(b, k, hw)

    # --- batch grouping: amortize per-grid-step overhead on tiny per-batch
    # work, but keep >= 2 batch blocks when possible so the "parallel" axis
    # can be sharded across both TensorCores (v7x megacore).
    if batch_block is None:
        batch_block = min(b, 8) if (c * hw) <= 128 * 1024 else 1
        if b >= 2:
            batch_block = min(batch_block, max(1, b // 2))
    batch_block = max(1, min(batch_block, b))
    b_pad = _round_up(b, batch_block)

    # --- spatial (hw) tile: multiple of 128 lanes, sized so double-buffered
    # x/p input blocks stay within a conservative (v5e/v7x-safe) VMEM budget.
    itemsize = jnp.dtype(x.dtype).itemsize
    if hw_tile is None:
        input_budget = 24 * 1024 * 1024
        per_col = 2 * batch_block * (c + k) * itemsize  # 2 = double buffering
        fit = (input_budget // per_col) // 128 * 128
        hw_tile = max(128, min(_round_up(hw, 128), fit, 4096))
    hw_tile = max(128, _round_up(hw_tile, 128))
    hw_tile = min(hw_tile, _round_up(hw, 128))
    hw_pad = _round_up(hw, hw_tile)
    num_hw_tiles = hw_pad // hw_tile

    # Pad batch / spatial extents; padded spatial columns are masked in-kernel,
    # padded batch rows are sliced off below (zero p -> uniform softmax, no NaN).
    if b_pad != b or hw_pad != hw:
        x_flat = jnp.pad(x_flat, ((0, b_pad - b), (0, 0), (0, hw_pad - hw)))
        p_flat = jnp.pad(p_flat, ((0, b_pad - b), (0, 0), (0, hw_pad - hw)))

    kernel = functools.partial(
        _dict_init_kernel,
        hw=hw, hw_tile=hw_tile,
        num_hw_tiles=num_hw_tiles,
        mask_cols=(hw_pad != hw),
    )

    out_kc = pl.pallas_call(
        kernel,
        out_shape=jax.ShapeDtypeStruct((b_pad, k, c), x.dtype),
        grid_spec=pltpu.PrefetchScalarGridSpec(
            num_scalar_prefetch=0,
            grid=(b_pad // batch_block, num_hw_tiles),
            in_specs=[
                pl.BlockSpec((batch_block, c, hw_tile), lambda bi, ti: (bi, 0, ti)),
                pl.BlockSpec((batch_block, k, hw_tile), lambda bi, ti: (bi, 0, ti)),
            ],
            out_specs=pl.BlockSpec((batch_block, k, c), lambda bi, ti: (bi, 0, 0)),
            scratch_shapes=[
                pltpu.VMEM((batch_block, k, c), jnp.float32),
                pltpu.VMEM((batch_block, k, 1), jnp.float32),
            ],
        ),
        compiler_params=pltpu.CompilerParams(
            dimension_semantics=("parallel", "arbitrary"),
            vmem_limit_bytes=vmem_limit_bytes,
        ),
    )(x_flat, p_flat)

    # Lane-dense (b, k, c) out of the kernel; transpose back to the module's
    # (b, c, k) layout in plain XLA (tiny tensor).
    return jnp.transpose(out_kc[:b], (0, 2, 1))


def _reference(x, p):
    b, c, h, w = x.shape
    k = p.shape[1]
    xf = x.reshape(b, c, -1).astype(jnp.float32)
    pf = p.reshape(b, k, -1).astype(jnp.float32)
    pf = jax.nn.softmax(pf, axis=1)
    pf = pf / (jnp.sum(pf, axis=-1, keepdims=True) + 1e-6)
    return jnp.einsum("bcn,bkn->bck", xf, pf)


if __name__ == "__main__":
    key = jax.random.PRNGKey(0)
    kx, kp = jax.random.split(key)

    b, c, h, w = 2, 4, 16, 16
    k = 8

    x = jax.random.normal(kx, (b, c, h, w), dtype=jnp.float32)
    p = jax.random.normal(kp, (b, k, h, w), dtype=jnp.float32)

    out = dictionary_initialization(x, p)
    jax.block_until_ready(out)

    ref = _reference(x, p)
    assert out.shape == (b, c, k), out.shape
    # Slightly loose tolerance: approx (EUP) reciprocals are used in place of
    # exact f32 divides.
    err = float(jnp.max(jnp.abs(out.astype(jnp.float32) - ref)))
    assert jnp.allclose(out.astype(jnp.float32), ref, atol=2e-3, rtol=2e-3), err

    print("KERNEL_OK")
</pallas_src>

<mosaic_0001>
module attributes {stable_mosaic.version = 11 : i64} {
  func.func @_dict_init_kernel(%arg0: i32, %arg1: i32, %arg2: memref<1x4x256xf32, #tpu.memory_space<vmem>>, %arg3: memref<1x8x256xf32, #tpu.memory_space<vmem>>, %arg4: memref<1x8x4xf32, #tpu.memory_space<vmem>>, %arg5: memref<1x8x4xf32, #tpu.memory_space<vmem>>, %arg6: memref<1x8x1xf32, #tpu.memory_space<vmem>>) attributes {dimension_semantics = [#tpu.dimension_semantics<parallel>, #tpu.dimension_semantics<arbitrary>], iteration_bounds = array<i64: 2, 1>, scalar_prefetch = 0 : i64, scratch_operands = 2 : i64, tpu.core_type = #tpu.core_type<tc>, window_params = [{transform_indices = @transform_0, window_bounds = array<i64: 1, 4, 256>}, {transform_indices = @transform_1, window_bounds = array<i64: 1, 8, 256>}, {transform_indices = @transform_2, window_bounds = array<i64: 1, 8, 4>}]} {
    %c0 = arith.constant 0 : index
    %c0_0 = arith.constant 0 : index
    %c0_1 = arith.constant 0 : index
    %0 = vector.load %arg2[%c0, %c0_0, %c0_1] : memref<1x4x256xf32, #tpu.memory_space<vmem>>, vector<1x4x256xf32>
    %c0_2 = arith.constant 0 : index
    %c0_3 = arith.constant 0 : index
    %c0_4 = arith.constant 0 : index
    %1 = vector.load %arg3[%c0_2, %c0_3, %c0_4] : memref<1x8x256xf32, #tpu.memory_space<vmem>>, vector<1x8x256xf32>
    %cst = arith.constant dense<0xFF800000> : vector<1x256xf32>
    %2 = vector.multi_reduction <maximumf>, %1, %cst [1] : vector<1x8x256xf32> to vector<1x256xf32>
    %3 = vector.shape_cast %2 : vector<1x256xf32> to vector<1x1x256xf32>
    %4 = vector.broadcast %3 : vector<1x1x256xf32> to vector<1x8x256xf32>
    %5 = arith.subf %1, %4 : vector<1x8x256xf32>
    %6 = math.exp %5 : vector<1x8x256xf32>
    %cst_5 = arith.constant dense<0.000000e+00> : vector<1x256xf32>
    %7 = vector.multi_reduction <add>, %6, %cst_5 [1] : vector<1x8x256xf32> to vector<1x256xf32>
    %8 = vector.shape_cast %7 : vector<1x256xf32> to vector<1x1x256xf32>
    %9 = tpu.reciprocal %8 {approx = true} : vector<1x1x256xf32> -> vector<1x1x256xf32>
    %10 = vector.broadcast %9 : vector<1x1x256xf32> to vector<1x8x256xf32>
    %11 = arith.mulf %6, %10 : vector<1x8x256xf32>
    %cst_6 = arith.constant dense<0.000000e+00> : vector<1x8xf32>
    %12 = vector.multi_reduction <add>, %11, %cst_6 [2] : vector<1x8x256xf32> to vector<1x8xf32>
    %13 = vector.shape_cast %12 : vector<1x8xf32> to vector<1x8x1xf32>
    %cst_7 = arith.constant dense<0.000000e+00> : vector<1x8x4xf32>
    %14 = tpu.matmul %11, %0, %cst_7 {dimension_numbers = #tpu.dot_dimension_numbers<[2], [2], [1], [1], [0, 0, 0, 1, 1, 1], [0], [0]>} : vector<1x8x256xf32>, vector<1x4x256xf32>, vector<1x8x4xf32> -> vector<1x8x4xf32>
    %cst_8 = arith.constant 9.99999997E-7 : f32
    %15 = vector.broadcast %cst_8 : f32 to vector<1x8x1xf32>
    %16 = arith.addf %13, %15 : vector<1x8x1xf32>
    %17 = tpu.reciprocal %16 {approx = true} : vector<1x8x1xf32> -> vector<1x8x1xf32>
    %18 = vector.broadcast %17 : vector<1x8x1xf32> to vector<1x8x4xf32>
    %19 = arith.mulf %14, %18 : vector<1x8x4xf32>
    %c0_9 = arith.constant 0 : index
    %c0_10 = arith.constant 0 : index
    %c0_11 = arith.constant 0 : index
    %20 = vector.load %arg4[%c0_9, %c0_10, %c0_11] : memref<1x8x4xf32, #tpu.memory_space<vmem>>, vector<1x8x4xf32>
    tpu.vector_store %arg4[%c0_9, %c0_10, %c0_11], %19 {strides = array<i32>} : memref<1x8x4xf32, #tpu.memory_space<vmem>>, vector<1x8x4xf32>,
    return
  }
  func.func @transform_0(%arg0: i32, %arg1: i32) -> (i32, i32, i32) {
    %c0_i32 = arith.constant 0 : i32
    %c0_i32_0 = arith.constant 0 : i32
    return %arg0, %c0_i32, %arg1 : i32, i32, i32
  }
  func.func @transform_1(%arg0: i32, %arg1: i32) -> (i32, i32, i32) {
    %c0_i32 = arith.constant 0 : i32
    %c0_i32_0 = arith.constant 0 : i32
    return %arg0, %c0_i32, %arg1 : i32, i32, i32
  }
  func.func @transform_2(%arg0: i32, %arg1: i32) -> (i32, i32, i32) {
    %c0_i32 = arith.constant 0 : i32
    %c0_i32_0 = arith.constant 0 : i32
    %c0_i32_1 = arith.constant 0 : i32
    return %arg0, %c0_i32, %c0_i32_0 : i32, i32, i32
  }
}

</mosaic_0001>

<bundles_post_ra>
// kernel: tpu_custom_call.1
= control target key start
LH: loop header
LB: loop body
LE: loop exit
PB: predicated region body
PF: predicated region fallthrough
CT: control target
= control target key end

     0   :  { %7 = vsyncpa [#allocation5], 0  ;;  %s783_s0 = inlined_call_operand.hbm [shape: f32[2,4,256], index: 0, kind: input, shape index: {}]   ;;  %s784_s1 = inlined_call_operand.hbm [shape: f32[2,8,256], index: 1, kind: input, shape index: {}]   ;;  %s785_s2 = inlined_call_operand.vmem [shape: f32[2,8,4], index: 2, kind: output, shape index: {}]  }
   0x1   :  { %9 = vsyncpa [#allocation5 + $0x1], 0 }
   0x2   :  { %10 = vsyncpa [#allocation7], 0 }
   0x3   :  { %12 = vsyncpa [#allocation7 + $0x1], 0  ;;  %s655_s9 = smov 0   ;;  %s657_s10 = smov 0  }
   0x4   :  { %s659_s11 = smov 0   ;;  %s661_s12 = smov 0  }
   0x5   :  { %s663_s13 = smov 0   ;;  %s665_s14 = smov 0  }
   0x6 LB: > { %s437_s15 = sadd.s32 4294967295, %s636_s14   ;;  %s30_s16 = sadd.s32 1, %s632_s13  ;;  %s636_s14 = sphi %s665_s14, %s18_s14   ;;  %s632_s13 = sphi %s663_s13, %s794_s13   ;;  %s628_s12 = sphi %s661_s12, %s793_s12   ;;  %s624_s11 = sphi %s659_s11, %s792_s11   ;;  %s620_s10 = sphi %s657_s10, %s791_s10   ;;  %s616_s9 = sphi %s655_s9, %s790_s9  }
   0x7   : > { %p32_p0 = scmp.ge.s32.totalorder %s30_s16, 2  ;;  %s39_s17 = sadd.s32 1, %s624_s11 }
   0x8   : > { %p46_p1 = scmp.ne.s32.totalorder %s624_s11, %s620_s10  ;;  %p47_p2 = scmp.eq.s32.totalorder %s636_s14, 0 }
   0x9   : > { %s796_s16 = smov (%p32_p0, %s30_s16), 0  ;;  %p52_p4 = scmp.ne.s32.totalorder %s620_s10, %s616_s9 }
   0xa   : > { %p691_p3 = por %p47_p2, %p46_p1  ;;  %s34_s19 = ssub.s32 %s632_s13, %s796_s16 }
   0xb   : > { %p53_p5 = scmp.eq.s32.totalorder %s437_s15, 0  ;;  %p37_p6 = scmp.eq.s32.totalorder %s34_s19, 0 }
   0xc   : > { %p466_p8 = scmp.lt.s32.totalorder %s636_s14, 2  ;;  %s707_s22 = sand.u32 1, %s624_s11  }
   0xd   : > { %p698_p7 = por %p53_p5, %p52_p4  ;;  %s453_s23 = sshll.u32 %s632_s13, 7 }
   0xe   : > { %s704_s21 = scalar_select %p37_p6, %s624_s11, %s39_s17  }
   0xf   : > { %s441_s24 = sshll.u32 %s707_s22, 3  ;;  %s142_s27 = scalar_lea.hbm %s783_s0, %s453_s23 }
  0x10   : > { %s134_s28 = scalar_lea.vmem [#allocation4], %s441_s24  ;;  %p716_p9 = pnand %p466_p8, %p691_p3 }
  0x11   : > { %s144_s29 = sshll.u32 %s134_s28, 4  ;;  %p447_p10 = scmp.ge.s32.totalorder %s636_s14, 1  ;;  %s145_s29 = int_to_ptr.vmem [resolvable:$true] %s144_s29 }
  0x12   : > { %p170_p11 = scmp.lt.s32.totalorder %s636_s14, 3  ;;  %s131_s3 = scalar_lea.sflag [#allocation5], %s707_s22 }
  0x13   : > { %p528_p12 = pneg %p716_p9  ;;  %s539_s4 = scalar_lea.vmem %s145_s29, 128 }
  0x14   : > { %p540_p13 = scmp.ne.s32.totalorder %s145_s29, %s539_s4  ;;  %s638_s5 = smov [#allocation4]  }
  0x15   : > { %s544_s6 = sshll.u32 %s638_s5, 4  ;;  %s545_s6 = int_to_ptr.vmem [resolvable:$false] %s544_s6 }
  0x16   : > { %p542_p0 = pnand %p540_p13, %p528_p12  ;;  %s546_s7 = scalar_lea.vmem %s545_s6, 256 }
  0x17   : > { %p547_p2 = scmp.lt.s32.totalorder %s145_s29, %s545_s6  ;;  %p548_p3 = scmp.lt.s32.totalorder %s546_s7, %s539_s4 }
  0x18   : > { %p543_p1 = pneg %p542_p0 }
  0x19   : > { %p549_p4 = por %p548_p3, %p547_p2 }
  0x1b   : > { %p550_p5 = pnand %p549_p4, %p543_p1 }
  0x1d   : > { %553 = shalt.err (!%p550_p5)
}
  0x1e   : > { %462 = dma.hbm_to_vmem [thread:$0]  (!%p716_p9), %s142_s27, 128, %s145_s29, %s131_s3  }
  0x1f   : > { %p734_p6 = pnand %p447_p10, %p170_p11  ;;  %s444_s9 = sshll.u32 %s707_s22, 4 }
  0x20   : > { %s454_s15 = sshll.u32 %s632_s13, 8  ;;  %s155_s23 = scalar_lea.vmem [#allocation6], %s444_s9 }
  0x21   : > { %s163_s19 = scalar_lea.hbm %s784_s1, %s454_s15  ;;  %s165_s24 = sshll.u32 %s155_s23, 4  ;;  %s166_s24 = int_to_ptr.vmem [resolvable:$true] %s165_s24 }
  0x22   : > { %s152_s25 = scalar_lea.sflag [#allocation7], %s707_s22  ;;  %s567_s26 = scalar_lea.vmem %s166_s24, 256 }
  0x23   : > { %p568_p8 = scmp.ne.s32.totalorder %s166_s24, %s567_s26  ;;  %s639_s27 = smov [#allocation6]  }
  0x24   : > { %s572_s28 = sshll.u32 %s639_s27, 4  ;;  %s573_s28 = int_to_ptr.vmem [resolvable:$false] %s572_s28 }
  0x25   : > { %p570_p13 = pnand %p568_p8, %p528_p12  ;;  %s574_s29 = scalar_lea.vmem %s573_s28, 512 }
  0x26   : > { %p575_p10 = scmp.lt.s32.totalorder %s166_s24, %s573_s28  ;;  %p576_p11 = scmp.lt.s32.totalorder %s574_s29, %s567_s26 }
  0x27   : > { %p571_p0 = pneg %p570_p13 }
  0x28   : > { %p577_p1 = por %p576_p11, %p575_p10 }
  0x2a   : > { %p578_p2 = pnand %p577_p1, %p571_p0 }
  0x2c   : > { %581 = shalt.err (!%p578_p2)
}
  0x2d   : > { %465 = dma.hbm_to_vmem [thread:$0]  (!%p716_p9), %s163_s19, 256, %s166_s24, %s152_s25  }
  0x2e   : > { %174 = sbr.rel (%p734_p6) target bundleno = 312 (0x138), region = 28  ;;  %s176_s22 = sand.u32 (!%p734_p6), 1, %s620_s10  }
  0x2f   : > { %s448_s3 = sshll.u32 (!%p734_p6), %s176_s22, 3  ;;  %s177_s4 = scalar_lea.sflag (!%p734_p6), [#allocation5], %s176_s22 }
  0x30   : > { %s180_s5 = scalar_lea.vmem (!%p734_p6), [#allocation4], %s448_s3 }
  0x33   : > { %607 = dma.done.wait (%p698_p7), %s177_s4, 128  }
  0x34   : > { %609 = vsyncadd (%p698_p7), %s177_s4, 4294967168  ;;  %s449_s6 = sshll.u32 %s176_s22, 4  ;;  %s186_s7 = scalar_lea.sflag [#allocation7], %s176_s22 }
  0x35   : > { %s189_s9 = scalar_lea.vmem [#allocation6], %s449_s6 }
  0x36   : > { %611 = dma.done.wait (%p698_p7), %s186_s7, 256  }
  0x37   : > { %613 = vsyncadd (%p698_p7), %s186_s7, 4294967040  ;;  %v221_v0 = vld [vmem:[%s189_s9] sm:$0xff]  ;;  %v222_v1 = vld [vmem:[%s189_s9 + $0x8] sm:$0xff]  ;;  %p216_p7 = scmp.lt.s32.totalorder %s628_s12, 1  ;;  %vm336_vm0 = vcmask 31744  }
  0x38   : > { %v220_v2 = vld [vmem:[%s180_s5] sm:$0xff]  ;;  %v223_v3 = vrot.slane %v221_v0, 4  ;;  %v229_v4 = vrot.slane %v222_v1, 4 }
  0x39   : > { %v261_v5 = vcombine.high %v220_v2, %v220_v2  ;;  %s798_s12 = smov (!%p216_p7, %s628_s12), 1 }
  0x3a   : > { %v224_v6 = vmax.f32 %v221_v0, %v223_v3  ;;  %v230_v7 = vmax.f32 %v222_v1, %v229_v4  ;;  %s450_s20 = sshll.u32 %s798_s12, 3 }
  0x3b   : > { %293 = vmatprep.subr.mxu0 %v261_v5  ;;  %s219_s15 = scalar_lea.vmem %s785_s2, %s450_s20 }
  0x3c   : > { %294 = vmatpush1.xpose.msra.mxu0 %v220_v2  ;;  %v225_v8 = vrot.slane %v224_v6, 2  ;;  %v231_v9 = vrot.slane %v230_v7, 2 }
  0x3e   : > { %v226_v10 = vmax.f32 %v224_v6, %v225_v8  ;;  %v232_v11 = vmax.f32 %v230_v7, %v231_v9 }
  0x40   : > { %v227_v12 = vrot.slane %v226_v10, 1  ;;  %v233_v13 = vrot.slane %v232_v11, 1 }
  0x42   : > { %v228_v14 = vmax.f32 %v226_v10, %v227_v12  ;;  %v234_v15 = vmax.f32 %v232_v11, %v233_v13 }
  0x44   : > { %v235_v16 = vsub.f32 %v221_v0, %v228_v14  ;;  %v236_v17 = vsub.f32 %v222_v1, %v234_v15 }
  0x46   : > { %v237_v18 = vmul.f32 1.442695, %v235_v16  ;;  %v239_v19 = vmul.f32 1.442695, %v236_v17 }
  0x48   : > { %516 = vpow2.f32 %v237_v18 }
  0x49   : > { %518 = vpow2.f32 %v239_v19 }
  0x55   : > { %v517_v20 = vpop.eup %516 }
  0x56   : > { %v519_v21 = vpop.eup %518  ;;  %v241_v22 = vrot.slane %v517_v20, 4 }
  0x57   : > { %v247_v23 = vrot.slane %v519_v21, 4 }
  0x58   : > { %v242_v24 = vadd.f32 %v517_v20, %v241_v22 }
  0x59   : > { %v248_v25 = vadd.f32 %v519_v21, %v247_v23 }
  0x5a   : > { %v243_v26 = vrot.slane %v242_v24, 2 }
  0x5b   : > { %v249_v27 = vrot.slane %v248_v25, 2 }
  0x5c   : > { %v244_v28 = vadd.f32 %v243_v26, %v242_v24 }
  0x5d   : > { %v250_v29 = vadd.f32 %v249_v27, %v248_v25 }
  0x5e   : > { %v245_v30 = vrot.slane %v244_v28, 1 }
  0x5f   : > { %v251_v31 = vrot.slane %v250_v29, 1 }
  0x60   : > { %v246_v32 = vadd.f32 %v245_v30, %v244_v28 }
  0x61   : > { %v252_v33 = vadd.f32 %v251_v31, %v250_v29 }
  0x62   : > { %520 = vrcp.f32 %v246_v32 }
  0x63   : > { %522 = vrcp.f32 %v252_v33 }
  0x6f   : > { %v521_v34 = vpop.eup %520 }
  0x70   : > { %v523_v35 = vpop.eup %522  ;;  %v255_v36 = vmul.f32 %v521_v34, %v517_v20 }
  0x71   : > { %v256_v37 = vmul.f32 %v523_v35, %v519_v21 }
  0x73   : > { %327 = vmatprep.mubr.f32.mxu0 %v256_v37  ;;  %v257_v38 = vadd.f32 %v256_v37, %v255_v36 }
  0x74   : > { %328 = vmatmul.mubr.f32.vlgmr.msra.gmra.mxu0 %v255_v36 }
  0x75   : > { %258 = vadd.xlane.f32.xlu0 %v257_v38 }
  0xfe   : > { %v259_v39 = vpop.xlane.xlu0 %258 }
  0xff   : > { %v333_v40 = vadd.f32 1e-06, %v259_v39 }
 0x101   : > { %524 = vrcp.f32 %v333_v40 }
 0x10e   : > { %v525_v41 = vpop.eup %524 }
 0x134   : > { %v329_v42 = vpop.f32.mrf.mxu0 }
 0x135   : > { %v335_v43 = vmul.f32 %v525_v41, %v329_v42 }
 0x136   : > { %v331_v44 = vpop.f32.mrf.mxu0 }
 0x137   : > { %337 = vst.msk [vmem:[%s219_s15] sm:$0xff] %vm336_vm0, %v335_v43 }
 0x138 PF: > { %s18_s14 = sadd.s32 1, %s636_s14   ;;  %s790_s9 = smov %s620_s10 }
 0x139   : > { %p15_p9 = scmp.ge.s32.totalorder %s18_s14, 4   ;;  %s791_s10 = smov %s624_s11 }
 0x13a   : > { %s792_s11 = smov %s704_s21  ;;  %s793_s12 = smov %s632_s13 }
 0x13b   : > { %s794_s13 = smov %s796_s16  ;;  %17 = sbr.rel (!%p15_p9) target bundleno = 6 (0x6), region = 81 }
 0x140   :  { %357 = vsyncpa [#allocation5], 1 }
 0x141   :  { %359 = vsyncpa [#allocation5 + $0x1], 1 }
 0x142   :  { %360 = vsyncpa [#allocation7], 1 }
 0x143   :  { %362 = vsyncpa [#allocation7 + $0x1], 1 }

</bundles_post_ra>
